<compile_context>
chip_gen: v5e
topology: v5e:2x2
jax: 0.10.0
libtpu: 0.0.40
codegen_flags: <defaults>
</compile_context>

<pallas_src>
import functools

import jax
import jax.numpy as jnp
from jax import lax
from jax.experimental import pallas as pl
from jax.experimental.pallas import tpu as pltpu

BIG = 1e30          # +inf stand-in for cross-batch / already-selected pairs
LANE = 128          # TPU lane width


def _fp_kernel(k, posk_ref, batchk_ref, xskip_ref, pos_t_ref, batch_ref, x_ref,
               w1a_ref, w1b_ref, b1_ref, w2_ref, b2_ref, out_ref):
    """One TM-row tile of skip (fine) points against all N source (coarse) points."""
    posk = posk_ref[...]                       # (TM, 3)  f32 query positions
    pos_t = pos_t_ref[...]                     # (3, N)   f32 source positions (transposed)
    tm = posk.shape[0]
    n = pos_t.shape[1]

    # Pairwise squared distances, computed directly per coordinate on the VPU:
    # no (TM,N) MXU matmul with K=3 and no catastrophic cancellation.
    d2 = jnp.zeros((tm, n), jnp.float32)
    for c in range(3):
        diff = posk[:, c:c + 1] - pos_t[c:c + 1, :]          # (TM,1)-(1,N) -> (TM,N)
        d2 = d2 + diff * diff

    # Batch-aware: only neighbors from the same graph.
    same = batchk_ref[...] == batch_ref[...]                 # (TM,1)==(1,N) -> (TM,N)
    d2 = jnp.where(same, d2, BIG)

    # Iterative k-NN selection with a SINGLE cross-lane reduction per iteration
    # (row min); the winning column is recovered with an equality mask and the
    # inverse-distance denominator is accumulated in-loop, so no final sum(W)
    # reduction is needed.  Exact f32 distance ties would select all tied columns
    # together (measure-zero for continuous positions).
    W = jnp.zeros((tm, n), jnp.float32)
    den = jnp.zeros((tm, 1), jnp.float32)
    for _ in range(k):                     # small static k -> unrolled
        mn = jnp.min(d2, axis=1, keepdims=True)              # (TM, 1)
        valid = mn < 0.5 * BIG                               # row has a same-batch neighbor left
        w = jnp.where(valid,
                      pl.reciprocal(jnp.maximum(mn, 1e-16), approx=False),
                      0.0)
        onehot = d2 == mn
        W = W + jnp.where(onehot, w, 0.0)
        den = den + w
        d2 = jnp.where(onehot, BIG, d2)

    # Interpolated features: dense (TM,N)x(N,C) on the MXU, bf16 operands, f32 accum.
    num = jnp.dot(W.astype(jnp.bfloat16), x_ref[...],
                  preferred_element_type=jnp.float32)        # (TM, C)
    interp = num * pl.reciprocal(jnp.maximum(den, 1e-12), approx=False)

    # x = cat([interp, x_skip], dim=1) followed by the MLP; the concat is fused
    # into the first linear by splitting W1 into (C,H) and (Cs,H) pieces.
    h = (jnp.dot(interp.astype(jnp.bfloat16), w1a_ref[...],
                 preferred_element_type=jnp.float32)
         + jnp.dot(xskip_ref[...], w1b_ref[...],
                   preferred_element_type=jnp.float32)
         + b1_ref[...])
    h = jnp.maximum(h, 0.0)
    h = (jnp.dot(h.astype(jnp.bfloat16), w2_ref[...],
                 preferred_element_type=jnp.float32)
         + b2_ref[...])
    out_ref[...] = jnp.maximum(h, 0.0)


def fp_module_forward(x, pos, batch, x_skip, pos_skip, batch_skip, params, k, tm=16):
    """Pallas implementation of FPModule.forward. Returns (x, pos_skip, batch_skip)."""
    w1a, w1b, b1, w2, b2 = params
    n, c = x.shape
    m, cs = x_skip.shape
    h_dim = w1a.shape[1]
    out_dim = w2.shape[1]

    # Lane-dense output slab: pad the last linear to a multiple of 128 columns so the
    # final stores are unmasked; slice back in the wrapper.
    out_pad = pl.cdiv(out_dim, LANE) * LANE
    w2p = jnp.zeros((h_dim, out_pad), jnp.float32).at[:, :out_dim].set(w2)
    b2p = jnp.zeros((1, out_pad), jnp.float32).at[0, :out_dim].set(b2)

    # Pad M (query rows) to a multiple of the row tile; padded rows get batch id -1 so
    # they never match any source point (den==0 -> output row is just relu(bias path)).
    m_pad = pl.cdiv(m, tm) * tm
    posk = jnp.zeros((m_pad, 3), jnp.float32).at[:m].set(pos_skip.astype(jnp.float32))
    batchk = jnp.full((m_pad, 1), -1, jnp.int32).at[:m, 0].set(batch_skip.astype(jnp.int32))
    xskip = jnp.zeros((m_pad, cs), jnp.bfloat16).at[:m].set(x_skip.astype(jnp.bfloat16))

    tiled = lambda shape: pl.BlockSpec(shape, lambda i: (i, 0))      # blocked over M rows
    resident = lambda shape: pl.BlockSpec(shape, lambda i: (0, 0))   # stays in VMEM across grid

    kernel = functools.partial(_fp_kernel, k)

    flops = (8 * m_pad * n                                    # distances + selection
             + 2 * m_pad * n * c                              # W @ x
             + 2 * m_pad * (c * h_dim + cs * h_dim + h_dim * out_pad))
    cost = pl.CostEstimate(
        flops=flops,
        transcendentals=m_pad * (k + 1),
        bytes_accessed=(4 * (m_pad * 3 + m_pad + 3 * n + n)
                        + 2 * (m_pad * cs + n * c)
                        + 2 * (c * h_dim + cs * h_dim + h_dim * out_pad)
                        + 4 * (h_dim + out_pad)
                        + 4 * m_pad * out_pad))

    out = pl.pallas_call(
        kernel,
        out_shape=jax.ShapeDtypeStruct((m_pad, out_pad), jnp.float32),
        grid=(m_pad // tm,),
        in_specs=[
            tiled((tm, 3)),              # pos_skip tile
            tiled((tm, 1)),              # batch_skip tile
            tiled((tm, cs)),             # x_skip tile (bf16)
            resident((3, n)),            # pos^T (source positions)
            resident((1, n)),            # batch (source)
            resident((n, c)),            # x (source features, bf16)
            resident((c, h_dim)),        # W1 (interp part, bf16)
            resident((cs, h_dim)),       # W1 (skip part, bf16)
            resident((1, h_dim)),        # b1
            resident((h_dim, out_pad)),  # W2 (bf16, lane-dense padded)
            resident((1, out_pad)),      # b2 (padded)
        ],
        out_specs=tiled((tm, out_pad)),
        compiler_params=pltpu.CompilerParams(
            # Independent row tiles -> megacore sharding on v7x; explicit VMEM budget
            # kept under v7x's 64 MiB physical VMEM (re-sweep `tm` per generation).
            dimension_semantics=("parallel",),
            vmem_limit_bytes=48 * 1024 * 1024,
        ),
        cost_estimate=cost,
    )(
        posk, batchk, xskip,
        pos.T.astype(jnp.float32),
        batch.reshape(1, -1).astype(jnp.int32),
        x.astype(jnp.bfloat16),
        w1a.astype(jnp.bfloat16),
        w1b.astype(jnp.bfloat16),
        b1.reshape(1, -1).astype(jnp.float32),
        w2p.astype(jnp.bfloat16),
        b2p,
    )
    # TODO(synk): for very large source clouds (N in the tens of thousands) add a second
    # "arbitrary" grid axis over N with a running top-k carried in VMEM scratch so the
    # (TM, N) intermediates stay bounded; not needed at these sizes.
    return out[:m, :out_dim], pos_skip, batch_skip


def _reference_forward(x, pos, batch, x_skip, pos_skip, batch_skip, params, k):
    """Pure-JAX reference mirroring torch_geometric.nn.knn_interpolate + MLP (f32)."""
    w1a, w1b, b1, w2, b2 = params
    d2 = jnp.sum((pos_skip[:, None, :] - pos[None, :, :]) ** 2, axis=-1)
    same = batch_skip[:, None] == batch[None, :]
    d2 = jnp.where(same, d2, jnp.inf)
    neg_d, idx = lax.top_k(-d2, k)
    dk = -neg_d
    w = 1.0 / jnp.maximum(dk, 1e-16)
    w = jnp.where(jnp.isinf(dk), 0.0, w)
    feats = x[idx]                                                   # (M, k, C)
    interp = jnp.sum(feats * w[..., None], axis=1) / jnp.sum(w, axis=1, keepdims=True)
    h = jnp.concatenate([interp, x_skip], axis=1)
    w1 = jnp.concatenate([w1a, w1b], axis=0)
    h = jnp.maximum(h @ w1 + b1, 0.0)
    h = jnp.maximum(h @ w2 + b2, 0.0)
    return h


if __name__ == "__main__":
    key = jax.random.PRNGKey(0)
    ks = jax.random.split(key, 8)

    # Small shapes: coarse level N=16 points with C=32 feats, fine (skip) level
    # M=32 points with Cs=16 feats, 2 graphs in the batch, k=3 neighbors.
    N, M, C, Cs, H, OUT, K = 16, 32, 32, 16, 64, 32, 3

    x = jax.random.normal(ks[0], (N, C), jnp.float32)
    pos = jax.random.uniform(ks[1], (N, 3), jnp.float32)
    batch = jnp.concatenate([jnp.zeros(N // 2, jnp.int32), jnp.ones(N // 2, jnp.int32)])
    x_skip = jax.random.normal(ks[2], (M, Cs), jnp.float32)
    pos_skip = jax.random.uniform(ks[3], (M, 3), jnp.float32)
    batch_skip = jnp.concatenate([jnp.zeros(M // 2, jnp.int32), jnp.ones(M // 2, jnp.int32)])

    # Deterministic MLP parameters: Linear(C+Cs -> H) + ReLU, Linear(H -> OUT) + ReLU.
    w1a = 0.1 * jax.random.normal(ks[4], (C, H), jnp.float32)
    w1b = 0.1 * jax.random.normal(ks[5], (Cs, H), jnp.float32)
    b1 = jnp.zeros((H,), jnp.float32)
    w2 = 0.1 * jax.random.normal(ks[6], (H, OUT), jnp.float32)
    b2 = 0.01 * jax.random.normal(ks[7], (OUT,), jnp.float32)
    params = (w1a, w1b, b1, w2, b2)

    out, pos_out, batch_out = fp_module_forward(
        x, pos, batch, x_skip, pos_skip, batch_skip, params, K, tm=16)
    jax.block_until_ready(out)

    ref = _reference_forward(x, pos, batch, x_skip, pos_skip, batch_skip, params, K)
    assert out.shape == (M, OUT)
    # bf16 MXU operands with f32 accumulation -> slightly looser tolerance than pure f32.
    assert jnp.allclose(out, ref, rtol=2e-2, atol=2e-2), "mismatch vs reference"

    print("KERNEL_OK")
</pallas_src>

<mosaic_0001>
module attributes {stable_mosaic.version = 11 : i64} {
  func.func @_fp_kernel(%arg0: i32, %arg1: memref<16x3xf32, #tpu.memory_space<vmem>>, %arg2: memref<16x1xi32, #tpu.memory_space<vmem>>, %arg3: memref<16x16xbf16, #tpu.memory_space<vmem>>, %arg4: memref<3x16xf32, #tpu.memory_space<vmem>>, %arg5: memref<1x16xi32, #tpu.memory_space<vmem>>, %arg6: memref<16x32xbf16, #tpu.memory_space<vmem>>, %arg7: memref<32x64xbf16, #tpu.memory_space<vmem>>, %arg8: memref<16x64xbf16, #tpu.memory_space<vmem>>, %arg9: memref<1x64xf32, #tpu.memory_space<vmem>>, %arg10: memref<64x128xbf16, #tpu.memory_space<vmem>>, %arg11: memref<1x128xf32, #tpu.memory_space<vmem>>, %arg12: memref<16x128xf32, #tpu.memory_space<vmem>>) attributes {dimension_semantics = [#tpu.dimension_semantics<parallel>], iteration_bounds = array<i64: 2>, scalar_prefetch = 0 : i64, scratch_operands = 0 : i64, tpu.core_type = #tpu.core_type<tc>, window_params = [{transform_indices = @transform_0, window_bounds = array<i64: 16, 3>}, {transform_indices = @transform_1, window_bounds = array<i64: 16, 1>}, {transform_indices = @transform_2, window_bounds = array<i64: 16, 16>}, {pipeline_mode = #tpu.pipeline_mode<synchronous>, transform_indices = @transform_3, window_bounds = array<i64: 3, 16>}, {pipeline_mode = #tpu.pipeline_mode<synchronous>, transform_indices = @transform_4, window_bounds = array<i64: 1, 16>}, {pipeline_mode = #tpu.pipeline_mode<synchronous>, transform_indices = @transform_5, window_bounds = array<i64: 16, 32>}, {pipeline_mode = #tpu.pipeline_mode<synchronous>, transform_indices = @transform_6, window_bounds = array<i64: 32, 64>}, {pipeline_mode = #tpu.pipeline_mode<synchronous>, transform_indices = @transform_7, window_bounds = array<i64: 16, 64>}, {pipeline_mode = #tpu.pipeline_mode<synchronous>, transform_indices = @transform_8, window_bounds = array<i64: 1, 64>}, {pipeline_mode = #tpu.pipeline_mode<synchronous>, transform_indices = @transform_9, window_bounds = array<i64: 64, 128>}, {pipeline_mode = #tpu.pipeline_mode<synchronous>, transform_indices = @transform_10, window_bounds = array<i64: 1, 128>}, {transform_indices = @transform_11, window_bounds = array<i64: 16, 128>}]} {
    %c0 = arith.constant 0 : index
    %c0_0 = arith.constant 0 : index
    %0 = vector.load %arg1[%c0, %c0_0] : memref<16x3xf32, #tpu.memory_space<vmem>>, vector<16x3xf32>
    %c0_1 = arith.constant 0 : index
    %c0_2 = arith.constant 0 : index
    %1 = vector.load %arg4[%c0_1, %c0_2] : memref<3x16xf32, #tpu.memory_space<vmem>>, vector<3x16xf32>
    %cst = arith.constant 0.000000e+00 : f32
    %2 = vector.broadcast %cst : f32 to vector<16x16xf32>
    %3 = vector.extract_strided_slice %0 {offsets = [0, 0], sizes = [16, 1], strides = [1, 1]} : vector<16x3xf32> to vector<16x1xf32>
    %4 = vector.extract_strided_slice %1 {offsets = [0, 0], sizes = [1, 16], strides = [1, 1]} : vector<3x16xf32> to vector<1x16xf32>
    %5 = vector.broadcast %3 : vector<16x1xf32> to vector<16x16xf32>
    %6 = vector.broadcast %4 : vector<1x16xf32> to vector<16x16xf32>
    %7 = arith.subf %5, %6 : vector<16x16xf32>
    %8 = arith.mulf %7, %7 : vector<16x16xf32>
    %9 = arith.addf %2, %8 : vector<16x16xf32>
    %10 = vector.extract_strided_slice %0 {offsets = [0, 1], sizes = [16, 1], strides = [1, 1]} : vector<16x3xf32> to vector<16x1xf32>
    %11 = vector.extract_strided_slice %1 {offsets = [1, 0], sizes = [1, 16], strides = [1, 1]} : vector<3x16xf32> to vector<1x16xf32>
    %12 = vector.broadcast %10 : vector<16x1xf32> to vector<16x16xf32>
    %13 = vector.broadcast %11 : vector<1x16xf32> to vector<16x16xf32>
    %14 = arith.subf %12, %13 : vector<16x16xf32>
    %15 = arith.mulf %14, %14 : vector<16x16xf32>
    %16 = arith.addf %9, %15 : vector<16x16xf32>
    %17 = vector.extract_strided_slice %0 {offsets = [0, 2], sizes = [16, 1], strides = [1, 1]} : vector<16x3xf32> to vector<16x1xf32>
    %18 = vector.extract_strided_slice %1 {offsets = [2, 0], sizes = [1, 16], strides = [1, 1]} : vector<3x16xf32> to vector<1x16xf32>
    %19 = vector.broadcast %17 : vector<16x1xf32> to vector<16x16xf32>
    %20 = vector.broadcast %18 : vector<1x16xf32> to vector<16x16xf32>
    %21 = arith.subf %19, %20 : vector<16x16xf32>
    %22 = arith.mulf %21, %21 : vector<16x16xf32>
    %23 = arith.addf %16, %22 : vector<16x16xf32>
    %c0_3 = arith.constant 0 : index
    %c0_4 = arith.constant 0 : index
    %24 = vector.load %arg2[%c0_3, %c0_4] : memref<16x1xi32, #tpu.memory_space<vmem>>, vector<16x1xi32>
    %c0_5 = arith.constant 0 : index
    %c0_6 = arith.constant 0 : index
    %25 = vector.load %arg5[%c0_5, %c0_6] : memref<1x16xi32, #tpu.memory_space<vmem>>, vector<1x16xi32>
    %26 = vector.broadcast %24 : vector<16x1xi32> to vector<16x16xi32>
    %27 = vector.broadcast %25 : vector<1x16xi32> to vector<16x16xi32>
    %28 = arith.cmpi eq, %26, %27 : vector<16x16xi32>
    %cst_7 = arith.constant 1.000000e+30 : f32
    %29 = vector.broadcast %cst_7 : f32 to vector<16x16xf32>
    %30 = arith.select %28, %23, %29 : vector<16x16xi1>, vector<16x16xf32>
    %cst_8 = arith.constant 0.000000e+00 : f32
    %31 = vector.broadcast %cst_8 : f32 to vector<16x16xf32>
    %cst_9 = arith.constant 0.000000e+00 : f32
    %32 = vector.broadcast %cst_9 : f32 to vector<16x1xf32>
    %cst_10 = arith.constant dense<0x7F800000> : vector<16xf32>
    %33 = vector.multi_reduction <minimumf>, %30, %cst_10 [1] : vector<16x16xf32> to vector<16xf32>
    %34 = vector.shape_cast %33 : vector<16xf32> to vector<16x1xf32>
    %cst_11 = arith.constant 5.000000e+29 : f32
    %35 = vector.broadcast %cst_11 : f32 to vector<16x1xf32>
    %36 = arith.cmpf olt, %34, %35 : vector<16x1xf32>
    %cst_12 = arith.constant 1.000000e-16 : f32
    %37 = vector.broadcast %cst_12 : f32 to vector<16x1xf32>
    %38 = arith.maximumf %34, %37 : vector<16x1xf32>
    %39 = tpu.reciprocal %38 : vector<16x1xf32> -> vector<16x1xf32>
    %cst_13 = arith.constant 0.000000e+00 : f32
    %40 = vector.broadcast %cst_13 : f32 to vector<16x1xf32>
    %41 = arith.select %36, %39, %40 : vector<16x1xi1>, vector<16x1xf32>
    %42 = vector.broadcast %34 : vector<16x1xf32> to vector<16x16xf32>
    %43 = arith.cmpf oeq, %30, %42 : vector<16x16xf32>
    %cst_14 = arith.constant 0.000000e+00 : f32
    %44 = vector.shape_cast %41 : vector<16x1xf32> to vector<16x1xf32>
    %45 = vector.broadcast %44 : vector<16x1xf32> to vector<16x16xf32>
    %46 = vector.broadcast %cst_14 : f32 to vector<16x16xf32>
    %47 = arith.select %43, %45, %46 : vector<16x16xi1>, vector<16x16xf32>
    %48 = arith.addf %31, %47 : vector<16x16xf32>
    %49 = arith.addf %32, %41 : vector<16x1xf32>
    %cst_15 = arith.constant 1.000000e+30 : f32
    %50 = vector.broadcast %cst_15 : f32 to vector<16x16xf32>
    %51 = arith.select %43, %50, %30 : vector<16x16xi1>, vector<16x16xf32>
    %cst_16 = arith.constant dense<0x7F800000> : vector<16xf32>
    %52 = vector.multi_reduction <minimumf>, %51, %cst_16 [1] : vector<16x16xf32> to vector<16xf32>
    %53 = vector.shape_cast %52 : vector<16xf32> to vector<16x1xf32>
    %cst_17 = arith.constant 5.000000e+29 : f32
    %54 = vector.broadcast %cst_17 : f32 to vector<16x1xf32>
    %55 = arith.cmpf olt, %53, %54 : vector<16x1xf32>
    %cst_18 = arith.constant 1.000000e-16 : f32
    %56 = vector.broadcast %cst_18 : f32 to vector<16x1xf32>
    %57 = arith.maximumf %53, %56 : vector<16x1xf32>
    %58 = tpu.reciprocal %57 : vector<16x1xf32> -> vector<16x1xf32>
    %cst_19 = arith.constant 0.000000e+00 : f32
    %59 = vector.broadcast %cst_19 : f32 to vector<16x1xf32>
    %60 = arith.select %55, %58, %59 : vector<16x1xi1>, vector<16x1xf32>
    %61 = vector.broadcast %53 : vector<16x1xf32> to vector<16x16xf32>
    %62 = arith.cmpf oeq, %51, %61 : vector<16x16xf32>
    %cst_20 = arith.constant 0.000000e+00 : f32
    %63 = vector.shape_cast %60 : vector<16x1xf32> to vector<16x1xf32>
    %64 = vector.broadcast %63 : vector<16x1xf32> to vector<16x16xf32>
    %65 = vector.broadcast %cst_20 : f32 to vector<16x16xf32>
    %66 = arith.select %62, %64, %65 : vector<16x16xi1>, vector<16x16xf32>
    %67 = arith.addf %48, %66 : vector<16x16xf32>
    %68 = arith.addf %49, %60 : vector<16x1xf32>
    %cst_21 = arith.constant 1.000000e+30 : f32
    %69 = vector.broadcast %cst_21 : f32 to vector<16x16xf32>
    %70 = arith.select %62, %69, %51 : vector<16x16xi1>, vector<16x16xf32>
    %cst_22 = arith.constant dense<0x7F800000> : vector<16xf32>
    %71 = vector.multi_reduction <minimumf>, %70, %cst_22 [1] : vector<16x16xf32> to vector<16xf32>
    %72 = vector.shape_cast %71 : vector<16xf32> to vector<16x1xf32>
    %cst_23 = arith.constant 5.000000e+29 : f32
    %73 = vector.broadcast %cst_23 : f32 to vector<16x1xf32>
    %74 = arith.cmpf olt, %72, %73 : vector<16x1xf32>
    %cst_24 = arith.constant 1.000000e-16 : f32
    %75 = vector.broadcast %cst_24 : f32 to vector<16x1xf32>
    %76 = arith.maximumf %72, %75 : vector<16x1xf32>
    %77 = tpu.reciprocal %76 : vector<16x1xf32> -> vector<16x1xf32>
    %cst_25 = arith.constant 0.000000e+00 : f32
    %78 = vector.broadcast %cst_25 : f32 to vector<16x1xf32>
    %79 = arith.select %74, %77, %78 : vector<16x1xi1>, vector<16x1xf32>
    %80 = vector.broadcast %72 : vector<16x1xf32> to vector<16x16xf32>
    %81 = arith.cmpf oeq, %70, %80 : vector<16x16xf32>
    %cst_26 = arith.constant 0.000000e+00 : f32
    %82 = vector.shape_cast %79 : vector<16x1xf32> to vector<16x1xf32>
    %83 = vector.broadcast %82 : vector<16x1xf32> to vector<16x16xf32>
    %84 = vector.broadcast %cst_26 : f32 to vector<16x16xf32>
    %85 = arith.select %81, %83, %84 : vector<16x16xi1>, vector<16x16xf32>
    %86 = arith.addf %67, %85 : vector<16x16xf32>
    %87 = arith.addf %68, %79 : vector<16x1xf32>
    %88 = arith.truncf %86 : vector<16x16xf32> to vector<16x16xbf16>
    %c0_27 = arith.constant 0 : index
    %c0_28 = arith.constant 0 : index
    %89 = vector.load %arg6[%c0_27, %c0_28] : memref<16x32xbf16, #tpu.memory_space<vmem>>, vector<16x32xbf16>
    %cst_29 = arith.constant dense<0.000000e+00> : vector<16x32xf32>
    %90 = tpu.matmul %88, %89, %cst_29 {dimension_numbers = #tpu.dot_dimension_numbers<[1], [0], [0], [1], [0, 0, 1, 1], [], []>} : vector<16x16xbf16>, vector<16x32xbf16>, vector<16x32xf32> -> vector<16x32xf32>
    %cst_30 = arith.constant 9.99999996E-13 : f32
    %91 = vector.broadcast %cst_30 : f32 to vector<16x1xf32>
    %92 = arith.maximumf %87, %91 : vector<16x1xf32>
    %93 = tpu.reciprocal %92 : vector<16x1xf32> -> vector<16x1xf32>
    %94 = vector.broadcast %93 : vector<16x1xf32> to vector<16x32xf32>
    %95 = arith.mulf %90, %94 : vector<16x32xf32>
    %96 = arith.truncf %95 : vector<16x32xf32> to vector<16x32xbf16>
    %c0_31 = arith.constant 0 : index
    %c0_32 = arith.constant 0 : index
    %97 = vector.load %arg7[%c0_31, %c0_32] : memref<32x64xbf16, #tpu.memory_space<vmem>>, vector<32x64xbf16>
    %cst_33 = arith.constant dense<0.000000e+00> : vector<16x64xf32>
    %98 = tpu.matmul %96, %97, %cst_33 {dimension_numbers = #tpu.dot_dimension_numbers<[1], [0], [0], [1], [0, 0, 1, 1], [], []>} : vector<16x32xbf16>, vector<32x64xbf16>, vector<16x64xf32> -> vector<16x64xf32>
    %c0_34 = arith.constant 0 : index
    %c0_35 = arith.constant 0 : index
    %99 = vector.load %arg3[%c0_34, %c0_35] : memref<16x16xbf16, #tpu.memory_space<vmem>>, vector<16x16xbf16>
    %c0_36 = arith.constant 0 : index
    %c0_37 = arith.constant 0 : index
    %100 = vector.load %arg8[%c0_36, %c0_37] : memref<16x64xbf16, #tpu.memory_space<vmem>>, vector<16x64xbf16>
    %cst_38 = arith.constant dense<0.000000e+00> : vector<16x64xf32>
    %101 = tpu.matmul %99, %100, %cst_38 {dimension_numbers = #tpu.dot_dimension_numbers<[1], [0], [0], [1], [0, 0, 1, 1], [], []>} : vector<16x16xbf16>, vector<16x64xbf16>, vector<16x64xf32> -> vector<16x64xf32>
    %102 = arith.addf %98, %101 : vector<16x64xf32>
    %c0_39 = arith.constant 0 : index
    %c0_40 = arith.constant 0 : index
    %103 = vector.load %arg9[%c0_39, %c0_40] : memref<1x64xf32, #tpu.memory_space<vmem>>, vector<1x64xf32>
    %104 = vector.broadcast %103 : vector<1x64xf32> to vector<16x64xf32>
    %105 = arith.addf %102, %104 : vector<16x64xf32>
    %cst_41 = arith.constant 0.000000e+00 : f32
    %106 = vector.broadcast %cst_41 : f32 to vector<16x64xf32>
    %107 = arith.maximumf %105, %106 : vector<16x64xf32>
    %108 = arith.truncf %107 : vector<16x64xf32> to vector<16x64xbf16>
    %c0_42 = arith.constant 0 : index
    %c0_43 = arith.constant 0 : index
    %109 = vector.load %arg10[%c0_42, %c0_43] : memref<64x128xbf16, #tpu.memory_space<vmem>>, vector<64x128xbf16>
    %cst_44 = arith.constant dense<0.000000e+00> : vector<16x128xf32>
    %110 = tpu.matmul %108, %109, %cst_44 {dimension_numbers = #tpu.dot_dimension_numbers<[1], [0], [0], [1], [0, 0, 1, 1], [], []>} : vector<16x64xbf16>, vector<64x128xbf16>, vector<16x128xf32> -> vector<16x128xf32>
    %c0_45 = arith.constant 0 : index
    %c0_46 = arith.constant 0 : index
    %111 = vector.load %arg11[%c0_45, %c0_46] : memref<1x128xf32, #tpu.memory_space<vmem>>, vector<1x128xf32>
    %112 = vector.broadcast %111 : vector<1x128xf32> to vector<16x128xf32>
    %113 = arith.addf %110, %112 : vector<16x128xf32>
    %cst_47 = arith.constant 0.000000e+00 : f32
    %114 = vector.broadcast %cst_47 : f32 to vector<16x128xf32>
    %115 = arith.maximumf %113, %114 : vector<16x128xf32>
    %c0_48 = arith.constant 0 : index
    %c0_49 = arith.constant 0 : index
    %116 = vector.load %arg12[%c0_48, %c0_49] : memref<16x128xf32, #tpu.memory_space<vmem>>, vector<16x128xf32>
    tpu.vector_store %arg12[%c0_48, %c0_49], %115 {strides = array<i32>} : memref<16x128xf32, #tpu.memory_space<vmem>>, vector<16x128xf32>,
    return
  }
  func.func @transform_0(%arg0: i32) -> (i32, i32) {
    %c0_i32 = arith.constant 0 : i32
    %c0_i32_0 = arith.constant 0 : i32
    return %arg0, %c0_i32 : i32, i32
  }
  func.func @transform_1(%arg0: i32) -> (i32, i32) {
    %c0_i32 = arith.constant 0 : i32
    %c0_i32_0 = arith.constant 0 : i32
    return %arg0, %c0_i32 : i32, i32
  }
  func.func @transform_2(%arg0: i32) -> (i32, i32) {
    %c0_i32 = arith.constant 0 : i32
    %c0_i32_0 = arith.constant 0 : i32
    return %arg0, %c0_i32 : i32, i32
  }
  func.func @transform_3(%arg0: i32) -> (i32, i32) {
    %c0_i32 = arith.constant 0 : i32
    %c0_i32_0 = arith.constant 0 : i32
    %c0_i32_1 = arith.constant 0 : i32
    return %c0_i32, %c0_i32_0 : i32, i32
  }
  func.func @transform_4(%arg0: i32) -> (i32, i32) {
    %c0_i32 = arith.constant 0 : i32
    %c0_i32_0 = arith.constant 0 : i32
    %c0_i32_1 = arith.constant 0 : i32
    return %c0_i32, %c0_i32_0 : i32, i32
  }
  func.func @transform_5(%arg0: i32) -> (i32, i32) {
    %c0_i32 = arith.constant 0 : i32
    %c0_i32_0 = arith.constant 0 : i32
    %c0_i32_1 = arith.constant 0 : i32
    return %c0_i32, %c0_i32_0 : i32, i32
  }
  func.func @transform_6(%arg0: i32) -> (i32, i32) {
    %c0_i32 = arith.constant 0 : i32
    %c0_i32_0 = arith.constant 0 : i32
    %c0_i32_1 = arith.constant 0 : i32
    return %c0_i32, %c0_i32_0 : i32, i32
  }
  func.func @transform_7(%arg0: i32) -> (i32, i32) {
    %c0_i32 = arith.constant 0 : i32
    %c0_i32_0 = arith.constant 0 : i32
    %c0_i32_1 = arith.constant 0 : i32
    return %c0_i32, %c0_i32_0 : i32, i32
  }
  func.func @transform_8(%arg0: i32) -> (i32, i32) {
    %c0_i32 = arith.constant 0 : i32
    %c0_i32_0 = arith.constant 0 : i32
    %c0_i32_1 = arith.constant 0 : i32
    return %c0_i32, %c0_i32_0 : i32, i32
  }
  func.func @transform_9(%arg0: i32) -> (i32, i32) {
    %c0_i32 = arith.constant 0 : i32
    %c0_i32_0 = arith.constant 0 : i32
    %c0_i32_1 = arith.constant 0 : i32
    return %c0_i32, %c0_i32_0 : i32, i32
  }
  func.func @transform_10(%arg0: i32) -> (i32, i32) {
    %c0_i32 = arith.constant 0 : i32
    %c0_i32_0 = arith.constant 0 : i32
    %c0_i32_1 = arith.constant 0 : i32
    return %c0_i32, %c0_i32_0 : i32, i32
  }
  func.func @transform_11(%arg0: i32) -> (i32, i32) {
    %c0_i32 = arith.constant 0 : i32
    %c0_i32_0 = arith.constant 0 : i32
    return %arg0, %c0_i32 : i32, i32
  }
}

</mosaic_0001>

<bundles_post_ra>
// kernel: tpu_custom_call.1
= control target key start
LH: loop header
LB: loop body
LE: loop exit
PB: predicated region body
PF: predicated region fallthrough
CT: control target
= control target key end

     0   :  { %s1419_s0 = inlined_call_operand.vmem [shape: f32[32,3], index: 0, kind: input, shape index: {}]   ;;  %s1420_s1 = inlined_call_operand.vmem [shape: s32[32,1], index: 1, kind: input, shape index: {}]   ;;  %s1421_s2 = inlined_call_operand.vmem [shape: bf16[32,16], index: 2, kind: input, shape index: {}]   ;;  %s1422_s3 = inlined_call_operand.vmem [shape: f32[3,16], index: 3, kind: input, shape index: {}]   ;;  %s1423_s4 = inlined_call_operand.vmem [shape: s32[1,16], index: 4, kind: input, shape index: {}]   ;;  %s1424_s5 = inlined_call_operand.vmem [shape: bf16[16,32], index: 5, kind: input, shape index: {}]   ;;  %s1425_s6 = inlined_call_operand.vmem [shape: bf16[32,64], index: 6, kind: input, shape index: {}]   ;;  %s1426_s7 = inlined_call_operand.vmem [shape: bf16[16,64], index: 7, kind: input, shape index: {}]   ;;  %s1427_s8 = inlined_call_operand.vmem [shape: f32[1,64], index: 8, kind: input, shape index: {}]   ;;  %s1428_s9 = inlined_call_operand.vmem [shape: bf16[64,128], index: 9, kind: input, shape index: {}]   ;;  %s1429_s10 = inlined_call_operand.vmem [shape: f32[1,128], index: 10, kind: input, shape index: {}]   ;;  %s1430_s11 = inlined_call_operand.hbm [shape: f32[32,128], index: 11, kind: output, shape index: {}]  }
   0x1   :  { %1432 = sst [smem:[#allocation5_spill]] %s1419_s0 }
   0x2   :  { %1433 = sst [smem:[#allocation6_spill]] %s1420_s1 }
   0x3   :  { %16 = vsyncpa [#allocation3], 0 }
   0x4   :  { %18 = vsyncpa [#allocation3 + $0x1], 0  ;;  %s1202_s17 = smov 0   ;;  %s1204_s18 = smov 0  }
   0x5   :  { %s1206_s19 = smov 0   ;;  %s1208_s20 = smov 0  }
   0x6 LB: > { %s1223_s21 = sadd.s32 4294967295, %s1135_s20   ;;  %s940_s22 = sadd.s32 4294967294, %s1135_s20   ;;  %s1135_s20 = sphi %s1208_s20, %s1443_s20   ;;  %s1131_s19 = sphi %s1206_s19, %s1442_s19   ;;  %s1127_s18 = sphi %s1204_s18, %s1441_s18   ;;  %s1123_s17 = sphi %s1202_s17, %s1440_s17  }
   0x7   : > { %s1227_s23 = sadd.s32 1, %s1135_s20   ;;  %s277_s24 = sadd.s32 1, %s1131_s19 }
   0x8   : > { %s274_s25 = ssub.s32 %s1135_s20, %s1227_s23  ;;  %p287_p0 = scmp.ne.s32.totalorder %s1131_s19, %s1127_s18 }
   0x9   : > { %p275_p1 = scmp.eq.s32.totalorder %s274_s25, 0  ;;  %p288_p2 = scmp.eq.s32.totalorder %s1223_s21, 1 }
   0xa   : > { %p293_p3 = scmp.ne.s32.totalorder %s1127_s18, %s1123_s17  ;;  %p294_p4 = scmp.eq.s32.totalorder %s940_s22, 1 }
   0xb   : > { %s1238_s26 = scalar_select %p275_p1, %s1131_s19, %s277_s24  }
   0xc   : > { %p1240_p5 = por %p288_p2, %p287_p0  ;;  %p1244_p6 = por %p294_p4, %p293_p3 }
   0xd   : > { %p943_p7 = scmp.ge.s32.totalorder %s1135_s20, 1  ;;  %p363_p8 = scmp.lt.s32.totalorder %s1135_s20, 3 }
   0xf   : > { %p364_p9 = pnand %p943_p7, %p363_p8 }
  0x10   : > { %s945_s29 = sshll.u32 (!%p364_p9), %s1223_s21, 1  ;;  %s1436_s0 = sld [smem:[#allocation5_spill]] (!%p364_p9) }
  0x11   : > { %367 = sbr.rel (%p364_p9) target bundleno = 974 (0x3ce), region = 64  ;;  %p414_p10 = scmp.lt.s32.totalorder (!%p364_p9), %s945_s29, 3 }
  0x12   : > { %s1437_s1 = sld [smem:[#allocation6_spill]] (!%p364_p9)  ;;  %s1005_s16 = sshll.u32 (!%p364_p9), %s1223_s21, 4 }
  0x16   : > { %v1137_v0 = vmov 1   ;;  %v1138_v1 = vmov 0   ;;  %v1139_v2 = vmov 2   ;;  %s1445_s29 = smov (!%p414_p10, %s945_s29), 3  ;;  %v435_v7 = vld [vmem:[%s1422_s3] sm:$0x7] }
  0x17   : > { %1051 = vset.pattern.permute.xlu1 %v1137_v0  ;;  %1050 = vset.pattern.permute.xlu0 %v1138_v1  ;;  %s946_s30 = sshll.u32 %s1445_s29, 3  ;;  %v461_v9 = vperm.slane %v435_v7, 1  ;;  %v446_v11 = vperm.slane %v435_v7, 0  ;;  %v476_v13 = vperm.slane %v435_v7, 2  ;;  %v1054_v30 = vld [vmem:[%s1423_s4] ss:$0 sm:$0xff] }
  0x18   : > { %1052 = vset.pattern.permute.xlu2 %v1139_v2  ;;  %s417_s14 = scalar_lea.vmem %s1436_s0, %s946_s30  ;;  %s423_s22 = scalar_lea.vmem %s1437_s1, %s946_s30  ;;  %vm1431_vm0 = vcmask 130048  }
  0x19   : > { %v433_v3 = vld [vmem:[%s417_s14] sm:$0xff]  ;;  %v434_v4 = vld [vmem:[%s417_s14 + $0x8] sm:$0xff]  ;;  %s410_s14 = sand.u32 1, %s1127_s18   ;;  %s850_s30 = scalar_lea.hbm %s1430_s11, %s1005_s16 }
  0x1a   : > { %454 = vperm.xlu1 %1051, %v433_v3   ;;  %438 = vperm.xlu0 %1050, %v433_v3   ;;  %v483_v5 = vld [vmem:[%s423_s22] sm:$0xff]  ;;  %v484_v6 = vld [vmem:[%s423_s22 + $0x8] sm:$0xff]  ;;  %s950_s22 = sshll.u32 %s1445_s29, 2  ;;  %s944_s15 = sshll.u32 %s410_s14, 4 }
  0x1b   : > { %469 = vperm.xlu2 %1052, %v433_v3   ;;  %s429_s13 = scalar_lea.vmem %s1421_s2, %s950_s22  ;;  %s412_s22 = scalar_lea.vmem [#allocation2], %s944_s15 }
  0x1c   : > { %s851_s12 = sshll.u32 %s412_s22, 4  ;;  %s839_s0 = scalar_lea.sflag [#allocation3], %s410_s14  ;;  %s852_s12 = int_to_ptr.vmem [resolvable:$true] %s851_s12 }
  0x1d   : > { %s1093_s16 = scalar_lea.hbm %s1430_s11, 32 }
  0x22   : > { %458 = vperm.xlu1 %1051, %v434_v4   ;;  %443 = vperm.xlu0 %1050, %v434_v4  }
  0x23   : > { %473 = vperm.xlu2 %1052, %v434_v4  }
  0x2a   : > { %1053 = vset.pattern.permute.xlu1 %v1138_v1  ;;  %487 = vperm.xlu0 %1050, %v483_v5  }
  0x2b   : > { %490 = vperm.xlu1 %1053, %v484_v6  }
  0x75   : > { %v470_v8 = vpop.permute.xlu2 %469 }
  0x76   : > { %v477_v17 = vsub.f32 %v470_v8, %v476_v13 }
  0x78   : > { %v479_v27 = vmul.f32 %v477_v17, %v477_v17 }
  0x7d   : > { %v474_v16 = vpop.permute.xlu2 %473 }
  0x7e   : > { %v478_v24 = vsub.f32 %v474_v16, %v476_v13 }
  0x80   : > { %v480_v31 = vmul.f32 %v478_v24, %v478_v24 }
  0x8c   : > { %v455_v10 = vpop.permute.xlu1 %454  ;;  %v439_v12 = vpop.permute.xlu0 %438 }
  0x8d   : > { %v462_v14 = vsub.f32 %v455_v10, %v461_v9  ;;  %v447_v15 = vsub.f32 %v439_v12, %v446_v11 }
  0x8f   : > { %v464_v18 = vmul.f32 %v462_v14, %v462_v14  ;;  %v449_v19 = vmul.f32 %v447_v15, %v447_v15 }
  0x91   : > { %v466_v28 = vadd.f32 %v464_v18, %v449_v19 }
  0x93   : > { %v481_v32 = vadd.f32 %v479_v27, %v466_v28 }
  0x94   : > { %v459_v20 = vpop.permute.xlu1 %458  ;;  %v444_v21 = vpop.permute.xlu0 %443 }
  0x95   : > { %v463_v22 = vsub.f32 %v459_v20, %v461_v9  ;;  %v448_v23 = vsub.f32 %v444_v21, %v446_v11 }
  0x97   : > { %v465_v25 = vmul.f32 %v463_v22, %v463_v22  ;;  %v450_v26 = vmul.f32 %v448_v23, %v448_v23 }
  0x99   : > { %v467_v29 = vadd.f32 %v465_v25, %v450_v26 }
  0x9b   : > { %v482_v35 = vadd.f32 %v480_v31, %v467_v29 }
  0x9c   : > { %v488_v33 = vpop.permute.xlu0 %487 }
  0x9d   : > { %vm493_vm1 = vcmp.eq.s32.totalorder %v488_v33, %v1054_v30  ;;  %v491_v34 = vpop.permute.xlu1 %490 }
  0x9e   : > { %v1266_v36 = vsel %vm493_vm1, %v481_v32, 1e+30  ;;  %vm494_vm2 = vcmp.eq.s32.totalorder %v491_v34, %v1054_v30 }
  0x9f   : > { %v1268_v37 = vsel %vm494_vm2, %v482_v35, 1e+30  ;;  %v498_v38 = vsel %vm1431_vm0, %v1266_v36, inf }
  0xa0   : > { %499 = vmin.xlane.f32.xlu2 %v498_v38  ;;  %v501_v39 = vsel %vm1431_vm0, %v1268_v37, inf }
  0xa1   : > { %502 = vmin.xlane.f32.xlu0 %v501_v39 }
 0x113   : > { %v1274_v40 = vpop.xlane.xlu2 %499 }
 0x114   : > { %vm538_vm3 = vcmp.eq.f32.partialorder %v1266_v36, %v1274_v40  ;;  %v1278_v41 = vpop.xlane.xlu0 %502  ;;  %v506_v46 = vmax.f32 %v1274_v40, 1e-16  ;;  %vm504_vm2 = vcmp.lt.f32.partialorder %v1274_v40, 5e+29 }
 0x115   : > { %vm539_vm4 = vcmp.eq.f32.partialorder %v1268_v37, %v1278_v41  ;;  %v1286_v42 = vsel %vm538_vm3, 1e+30, %v1266_v36  ;;  %v507_v47 = vmax.f32 %v1278_v41, 1e-16  ;;  %v996_v36 = vld [vmem:[%s1424_s5] sm:$0xff] }
 0x116   : > { %v548_v43 = vsel %vm1431_vm0, %v1286_v42, inf  ;;  %v1294_v44 = vsel %vm539_vm4, 1e+30, %v1268_v37  ;;  %1057 = vrcp.f32 %v506_v46  ;;  %vm513_vm8 = vweird.f32 %v506_v46  ;;  %665 = vmatpush.bf16.msra.mxu0 %v996_v36 }
 0x117   : > { %549 = vmin.xlane.f32.xlu1 %v548_v43  ;;  %v551_v45 = vsel %vm1431_vm0, %v1294_v44, inf  ;;  %1059 = vrcp.f32 %v507_v47  ;;  %v519_v1 = vand.u32 2147483648, %v506_v46  ;;  %v517_v2 = vand.u32 2147483647, %v506_v46 }
 0x118   : > { %552 = vmin.xlane.f32.xlu2 %v551_v45  ;;  %v531_v4 = vand.u32 2147483647, %v507_v47  ;;  %v533_v6 = vand.u32 2147483648, %v507_v47  ;;  %vm527_vm11 = vweird.f32 %v507_v47 }
 0x119   : > { %v520_v10 = vor.u32 1.1754944e-38, %v519_v1  ;;  %vm518_vm13 = vcmp.eq.f32.partialorder %v517_v2, 8.507059e+37 }
 0x11a   : > { %vm532_vm14 = vcmp.eq.f32.partialorder %v531_v4, 8.507059e+37  ;;  %v534_v15 = vor.u32 1.1754944e-38, %v533_v6 }
 0x11c   : > { %v1058_v48 = vpop.eup %1057 }
 0x11d   : > { %v1060_v49 = vpop.eup %1059  ;;  %v509_v50 = vmul.f32 %v1058_v48, %v506_v46  ;;  %vm514_vm7 = vweird.f32 %v1058_v48 }
 0x11e   : > { %v523_v51 = vmul.f32 %v1060_v49, %v507_v47  ;;  %vm528_vm9 = vweird.f32 %v1060_v49  ;;  %vm515_vm10 = vmor %vm513_vm8, %vm514_vm7  ;;  %vm505_vm7 = vcmp.lt.f32.partialorder %v1278_v41, 5e+29 }
 0x11f   : > { %v510_v52 = vsub.f32 1.0, %v509_v50  ;;  %vm529_vm12 = vmor %vm527_vm11, %vm528_vm9 }
 0x120   : > { %v524_v53 = vsub.f32 1.0, %v523_v51 }
 0x121   : > { %v511_v57 = vmul.f32 %v1058_v48, %v510_v52 }
 0x122   : > { %v525_v60 = vmul.f32 %v1060_v49, %v524_v53 }
 0x123   : > { %v512_v0 = vadd.f32 %v1058_v48, %v511_v57 }
 0x124   : > { %v526_v3 = vadd.f32 %v1060_v49, %v525_v60 }
 0x125   : > { %v516_v8 = vsel %vm515_vm10, %v1058_v48, %v512_v0 }
 0x126   : > { %v530_v12 = vsel %vm529_vm12, %v1060_v49, %v526_v3  ;;  %v521_v14 = vsel %vm518_vm13, %v520_v10, %v516_v8 }
 0x127   : > { %v535_v21 = vsel %vm532_vm14, %v534_v15, %v530_v12  ;;  %v536_v25 = vsel %vm504_vm2, %v521_v14, 0.0 }
 0x128   : > { %v537_v28 = vsel %vm505_vm7, %v535_v21, 0.0  ;;  %v540_v35 = vsel %vm538_vm3, %v536_v25, 0.0 }
 0x129   : > { %v541_v43 = vsel %vm539_vm4, %v537_v28, 0.0 }
 0x18a   : > { %v1300_v54 = vpop.xlane.xlu1 %549 }
 0x18b   : > { %v556_v55 = vmax.f32 %v1300_v54, 1e-16  ;;  %vm588_vm5 = vcmp.eq.f32.partialorder %v1286_v42, %v1300_v54  ;;  %v1305_v56 = vpop.xlane.xlu2 %552  ;;  %vm554_vm13 = vcmp.lt.f32.partialorder %v1300_v54, 5e+29 }
 0x18c   : > { %v1308_v58 = vmax.f32 %v1305_v56, 1e-16  ;;  %v1314_v59 = vsel %vm588_vm5, 1e+30, %v1286_v42  ;;  %vm589_vm6 = vcmp.eq.f32.partialorder %v1294_v44, %v1305_v56 }
 0x18d   : > { %1061 = vrcp.f32 %v556_v55  ;;  %v598_v61 = vsel %vm1431_vm0, %v1314_v59, inf  ;;  %v1325_v62 = vsel %vm589_vm6, 1e+30, %v1294_v44  ;;  %v569_v16 = vand.u32 2147483648, %v556_v55 }
 0x18e   : > { %1063 = vrcp.f32 %v1308_v58  ;;  %599 = vmin.xlane.f32.xlu2 %v598_v61  ;;  %v601_v63 = vsel %vm1431_vm0, %v1325_v62, inf  ;;  %v567_v19 = vand.u32 2147483647, %v556_v55  ;;  %v583_v20 = vand.u32 2147483648, %v1308_v58 }
 0x18f   : > { %602 = vmin.xlane.f32.xlu0 %v601_v63  ;;  %v581_v23 = vand.u32 2147483647, %v1308_v58  ;;  %vm563_vm8 = vweird.f32 %v556_v55  ;;  %v570_v26 = vor.u32 1.1754944e-38, %v569_v16  ;;  %vm577_vm10 = vweird.f32 %v1308_v58  ;;  %v998_v16 = vld [vmem:[%s1425_s6 + $0x8] sm:$0xff] }
 0x190   : > { %vm568_vm11 = vcmp.eq.f32.partialorder %v567_v19, 8.507059e+37  ;;  %v584_v30 = vor.u32 1.1754944e-38, %v583_v20  ;;  %vm555_vm0 = vcmp.lt.f32.partialorder %v1305_v56, 5e+29  ;;  %763 = vmatpush.bf16.msra.mxu2 %v998_v16  ;;  %v999_v19 = vld [vmem:[%s429_s13] sm:$0xff]  ;;  %s853_s13 = sshll.u32 %s850_s30, 4  ;;  %s854_s13 = int_to_ptr.hbm [resolvable:$true] %s853_s13 }
 0x191   : > { %vm582_vm14 = vcmp.eq.f32.partialorder %v581_v23, 8.507059e+37  ;;  %s1087_s29 = sshra.s32 %s854_s13, 4  ;;  %s1088_s29 = int_to_ptr.hbm [resolvable:$true] %s1087_s29 }
 0x192   : > { %s1089_s21 = scalar_lea.hbm %s1088_s29, 16  ;;  %p1094_p0 = scmp.lt.s32.totalorder %s1088_s29, %s1430_s11 }
 0x193   : > { %v1062_v5 = vpop.eup %1061  ;;  %p1090_p11 = scmp.ne.s32.totalorder %s1088_s29, %s1089_s21  ;;  %p1095_p1 = scmp.lt.s32.totalorder %s1093_s16, %s1089_s21 }
 0x194   : > { %v1064_v7 = vpop.eup %1063  ;;  %v559_v9 = vmul.f32 %v1062_v5, %v556_v55  ;;  %vm564_vm15 = vweird.f32 %v1062_v5 }
 0x195   : > { %v573_v11 = vmul.f32 %v1064_v7, %v1308_v58  ;;  %vm578_vm1 = vweird.f32 %v1064_v7  ;;  %vm565_vm9 = vmor %vm563_vm8, %vm564_vm15  ;;  %p1091_p12 = pnand %p1090_p11, %p1240_p5  ;;  %p1096_p2 = por %p1095_p1, %p1094_p0 }
 0x196   : > { %v560_v13 = vsub.f32 1.0, %v559_v9  ;;  %vm579_vm12 = vmor %vm577_vm10, %vm578_vm1 }
 0x197   : > { %v574_v17 = vsub.f32 1.0, %v573_v11  ;;  %p1092_p13 = pneg %p1091_p12 }
 0x198   : > { %v561_v18 = vmul.f32 %v1062_v5, %v560_v13 }
 0x199   : > { %v575_v22 = vmul.f32 %v1064_v7, %v574_v17  ;;  %v1000_v17 = vld [vmem:[%s1426_s7] sm:$0xff]  ;;  %p1097_p3 = pnand %p1096_p2, %p1092_p13 }
 0x19a   : > { %v562_v24 = vadd.f32 %v1062_v5, %v561_v18  ;;  %734 = vmatpush.bf16.msra.mxu1 %v1000_v17  ;;  %v997_v18 = vld [vmem:[%s1425_s6] sm:$0xff] }
 0x19b   : > { %v576_v27 = vadd.f32 %v1064_v7, %v575_v22  ;;  %764 = vmatpush.bf16.msra.mxu2 %v997_v18 }
 0x19c   : > { %v566_v29 = vsel %vm565_vm9, %v1062_v5, %v562_v24 }
 0x19d   : > { %v571_v31 = vsel %vm568_vm11, %v570_v26, %v566_v29  ;;  %v580_v32 = vsel %vm579_vm12, %v1064_v7, %v576_v27  ;;  %vm1438_vm11 = vcmask 130048  }
 0x19e   : > { %v586_v33 = vsel %vm554_vm13, %v571_v31, 0.0  ;;  %v585_v34 = vsel %vm582_vm14, %v584_v30, %v580_v32  ;;  %vm1439_vm12 = vmmov %vm1438_vm11 }
 0x19f   : > { %v590_v38 = vsel %vm588_vm5, %v586_v33, 0.0  ;;  %v587_v39 = vsel %vm555_vm0, %v585_v34, 0.0  ;;  %v594_v61 = vadd.f32 %v586_v33, %v536_v25  ;;  %964 = vmatmul.msk.bf16.vlgmr.msra.gmra.mxu1 %vm1439_vm12, %v999_v19 }
 0x1a0   : > { %v592_v45 = vadd.f32 %v590_v38, %v540_v35  ;;  %v591_v46 = vsel %vm589_vm6, %v587_v39, 0.0  ;;  %v595_v1 = vadd.f32 %v587_v39, %v537_v28 }
 0x1a1   : > { %v593_v47 = vadd.f32 %v591_v46, %v541_v43 }
 0x201   : > { %v600_v40 = vpop.xlane.xlu2 %599 }
 0x202   : > { %v606_v48 = vmax.f32 %v600_v40, 1e-16  ;;  %v603_v42 = vpop.xlane.xlu0 %602  ;;  %vm604_vm2 = vcmp.lt.f32.partialorder %v600_v40, 5e+29  ;;  %vm638_vm8 = vcmp.eq.f32.partialorder %v1314_v59, %v600_v40 }
 0x203   : > { %v607_v49 = vmax.f32 %v603_v42, 1e-16  ;;  %vm605_vm9 = vcmp.lt.f32.partialorder %v603_v42, 5e+29  ;;  %vm639_vm10 = vcmp.eq.f32.partialorder %v1325_v62, %v603_v42  ;;  %v1004_v42 = vld [vmem:[%s1428_s9 + $0x18] sm:$0xff] }
 0x204   : > { %1065 = vrcp.f32 %v606_v48  ;;  %v619_v53 = vand.u32 2147483648, %v606_v48  ;;  %v617_v55 = vand.u32 2147483647, %v606_v48  ;;  %vm613_vm4 = vweird.f32 %v606_v48  ;;  %824 = vmatpush.bf16.msra.mxu3 %v1004_v42 }
 0x205   : > { %1067 = vrcp.f32 %v607_v49  ;;  %v633_v56 = vand.u32 2147483648, %v607_v49  ;;  %v631_v58 = vand.u32 2147483647, %v607_v49  ;;  %vm627_vm6 = vweird.f32 %v607_v49 }
 0x206   : > { %v620_v63 = vor.u32 1.1754944e-38, %v619_v53  ;;  %vm618_vm15 = vcmp.eq.f32.partialorder %v617_v55, 8.507059e+37  ;;  %v1055_v53 = vld [vmem:[%s1427_s8] ss:$0 sm:$0xff] }
 0x207   : > { %v634_v3 = vor.u32 1.1754944e-38, %v633_v56  ;;  %vm632_vm7 = vcmp.eq.f32.partialorder %v631_v58, 8.507059e+37 }
 0x20a   : > { %v1066_v50 = vpop.eup %1065 }
 0x20b   : > { %v1068_v37 = vpop.eup %1067  ;;  %v609_v41 = vmul.f32 %v1066_v50, %v606_v48  ;;  %vm614_vm0 = vweird.f32 %v1066_v50 }
 0x20c   : > { %v623_v51 = vmul.f32 %v1068_v37, %v607_v49  ;;  %vm628_vm3 = vweird.f32 %v1068_v37  ;;  %vm615_vm5 = vmor %vm613_vm4, %vm614_vm0  ;;  %v1003_v49 = vld [vmem:[%s1428_s9 + $0x10] sm:$0xff] }
 0x20d   : > { %v610_v52 = vsub.f32 1.0, %v609_v41  ;;  %vm629_vm1 = vmor %vm627_vm6, %vm628_vm3  ;;  %825 = vmatpush.bf16.msra.mxu3 %v1003_v49 }
 0x20e   : > { %v624_v44 = vsub.f32 1.0, %v623_v51 }
 0x20f   : > { %v611_v54 = vmul.f32 %v1066_v50, %v610_v52 }
 0x210   : > { %v625_v57 = vmul.f32 %v1068_v37, %v624_v44 }
 0x211   : > { %v612_v60 = vadd.f32 %v1066_v50, %v611_v54 }
 0x212   : > { %v626_v0 = vadd.f32 %v1068_v37, %v625_v57 }
 0x213   : > { %v616_v2 = vsel %vm615_vm5, %v1066_v50, %v612_v60  ;;  %v1002_v50 = vld [vmem:[%s1428_s9 + $0x8] sm:$0xff] }
 0x214   : > { %v621_v4 = vsel %vm618_vm15, %v620_v63, %v616_v2  ;;  %v630_v5 = vsel %vm629_vm1, %v1068_v37, %v626_v0  ;;  %vm753_vm1 = vcmask 261120   ;;  %826 = vmatpush.bf16.msra.mxu3 %v1002_v50  ;;  %v1001_v37 = vld [vmem:[%s1428_s9] sm:$0xff] }
 0x215   : > { %v636_v6 = vsel %vm604_vm2, %v621_v4, 0.0  ;;  %v635_v7 = vsel %vm632_vm7, %v634_v3, %v630_v5  ;;  %vm816_vm2 = vcmask 523264   ;;  %v1056_v63 = vld [vmem:[%s1429_s10] ss:$0 sm:$0xff] }
 0x216   : > { %v640_v8 = vsel %vm638_vm8, %v636_v6, 0.0  ;;  %v644_v9 = vadd.f32 %v636_v6, %v594_v61  ;;  %v637_v10 = vsel %vm605_vm9, %v635_v7, 0.0 }
 0x217   : > { %v642_v11 = vadd.f32 %v640_v8, %v592_v45  ;;  %v641_v12 = vsel %vm639_vm10, %v637_v10, 0.0  ;;  %v645_v13 = vadd.f32 %v637_v10, %v595_v1 }
 0x218   : > { %v643_v14 = vadd.f32 %v641_v12, %v593_v47  ;;  %v672_v59 = vmax.f32 %v644_v9, 1e-12  ;;  %827 = vmatpush.bf16.msra.mxu3 %v1001_v37 }
 0x219   : > { %v673_v62 = vmax.f32 %v645_v13, 1e-12 }
 0x21a   : > { %v646_v15 = vpack.c.bf16 %v643_v14, %v642_v11  ;;  %1069 = vrcp.f32 %v672_v59  ;;  %vm679_vm0 = vweird.f32 %v672_v59  ;;  %v685_v31 = vand.u32 2147483648, %v672_v59 }
 0x21b   : > { %1071 = vrcp.f32 %v673_v62  ;;  %v699_v32 = vand.u32 2147483648, %v673_v62  ;;  %v683_v33 = vand.u32 2147483647, %v672_v59  ;;  %vm693_vm4 = vweird.f32 %v673_v62 }
 0x21c   : > { %955 = vmatmul.msk.bf16.vlgmr.msra.gmra.mxu0 %vm1438_vm11, %v646_v15  ;;  %v697_v34 = vand.u32 2147483647, %v673_v62  ;;  %v686_v39 = vor.u32 1.1754944e-38, %v685_v31  ;;  %v736_v41 = vpop.f32.mrf.mxu1 }
 0x21d   : > { %v700_v43 = vor.u32 1.1754944e-38, %v699_v32  ;;  %vm684_vm6 = vcmp.eq.f32.partialorder %v683_v33, 8.507059e+37 }
 0x21e   : > { %vm698_vm15 = vcmp.eq.f32.partialorder %v697_v34, 8.507059e+37 }
 0x220   : > { %v1070_v20 = vpop.eup %1069 }
 0x221   : > { %v1072_v21 = vpop.eup %1071  ;;  %v675_v22 = vmul.f32 %v1070_v20, %v672_v59  ;;  %vm680_vm13 = vweird.f32 %v1070_v20 }
 0x222   : > { %v689_v23 = vmul.f32 %v1072_v21, %v673_v62  ;;  %vm694_vm14 = vweird.f32 %v1072_v21  ;;  %vm681_vm3 = vmor %vm679_vm0, %vm680_vm13 }
 0x223   : > { %v676_v24 = vsub.f32 1.0, %v675_v22  ;;  %vm695_vm5 = vmor %vm693_vm4, %vm694_vm14 }
 0x224   : > { %v690_v25 = vsub.f32 1.0, %v689_v23  ;;  %v738_v44 = vpop.f32.mrf.mxu1 }
 0x225   : > { %v677_v26 = vmul.f32 %v1070_v20, %v676_v24 }
 0x226   : > { %v691_v27 = vmul.f32 %v1072_v21, %v690_v25 }
 0x227   : > { %v678_v29 = vadd.f32 %v1070_v20, %v677_v26 }
 0x228   : > { %v692_v30 = vadd.f32 %v1072_v21, %v691_v27 }
 0x229   : > { %v682_v35 = vsel %vm681_vm3, %v1070_v20, %v678_v29 }
 0x22a   : > { %v696_v38 = vsel %vm695_vm5, %v1072_v21, %v692_v30  ;;  %v687_v45 = vsel %vm684_vm6, %v686_v39, %v682_v35 }
 0x22b   : > { %v701_v47 = vsel %vm698_vm15, %v700_v43, %v696_v38 }
 0x299   : > { %v667_v28 = vpop.f32.mrf.mxu0 }
 0x29a   : > { %v702_v36 = vmul.f32 %v687_v45, %v667_v28 }
 0x2a1   : > { %v669_v46 = vpop.f32.mrf.mxu0 }
 0x2a2   : > { %v703_v40 = vmul.f32 %v701_v47, %v669_v46 }
 0x2a4   : > { %v704_v48 = vpack.c.bf16 %v703_v40, %v702_v36 }
 0x2a6   : > { %973 = vmatmul.msk.bf16.vlgmr.msra.gmra.mxu2 %vm753_vm1, %v704_v48 }
 0x329   : > { %v766_v51 = vpop.f32.mrf.mxu2 }
 0x32a   : > { %v767_v52 = vadd.f32 %v766_v51, %v736_v41 }
 0x32c   : > { %v775_v55 = vadd.f32 %v1055_v53, %v767_v52 }
 0x32e   : > { %v777_v58 = vmax.f32 %v775_v55, 0.0 }
 0x331   : > { %v768_v54 = vpop.f32.mrf.mxu2 }
 0x332   : > { %v769_v56 = vadd.f32 %v768_v54, %v738_v44 }
 0x334   : > { %v776_v57 = vadd.f32 %v1055_v53, %v769_v56 }
 0x336   : > { %v778_v60 = vmax.f32 %v776_v57, 0.0 }
 0x338   : > { %v779_v61 = vpack.c.bf16 %v778_v60, %v777_v58 }
 0x33a   : > { %990 = vmatmul.msk.bf16.vlgmr.msra.gmra.mxu3 %vm816_vm2, %v779_v61 }
 0x3bd   : > { %v829_v0 = vpop.f32.mrf.mxu3 }
 0x3be   : > { %v830_v1 = vadd.f32 %v1056_v63, %v829_v0 }
 0x3c0   : > { %v834_v2 = vmax.f32 %v830_v1, 0.0 }
 0x3c2   : > { %836 = vst [vmem:[%s412_s22] sm:$0xff] %v834_v2 }
 0x3c5   : > { %v831_v3 = vpop.f32.mrf.mxu3 }
 0x3c6   : > { %v832_v4 = vadd.f32 %v1056_v63, %v831_v3 }
 0x3c8   : > { %v835_v5 = vmax.f32 %v832_v4, 0.0 }
 0x3ca   : > { %837 = vst [vmem:[%s412_s22 + $0x8] sm:$0xff] %v835_v5 }
 0x3cb   : > { %1100 = shalt.err (!%p1097_p3)
}
 0x3cc   : > { %s1140_s14 = smov 128   ;;  %s1141_s22 = smov 8  }
 0x3cd   : > { %1006 = dma.vmem_to_hbm [thread:$0]  (%p1240_p5), %s852_s12, 256, %s854_s13, %s839_s0, %s1140_s14, %s1140_s14, %s1141_s22  }
 0x3ce PF: > { %p1012_p4 = scmp.ge.s32.totalorder %s1135_s20, 2  ;;  %s868_s1 = sand.u32 1, %s1123_s17  }
 0x3cf   : > { %s869_s30 = scalar_lea.sflag [#allocation3], %s868_s1 }
 0x3d0   : > { %p1009_p7 = pnand %p1012_p4, %p1244_p6 }
 0x3d2   : > { %p1010_p8 = pneg %p1009_p7 }
 0x3d4   : > { %1118 = dma.done.wait (%p1010_p8), %s869_s30, 256  }
 0x3d5   : > { %1120 = vsyncadd (%p1010_p8), %s869_s30, 4294967040  ;;  %p21_p9 = scmp.ge.s32.totalorder %s1227_s23, 4   ;;  %s1440_s17 = smov %s1127_s18 }
 0x3d6   : > { %s1441_s18 = smov %s1131_s19  ;;  %s1442_s19 = smov %s1238_s26 }
 0x3d7   : > { %s1443_s20 = smov %s1227_s23  ;;  %23 = sbr.rel (!%p21_p9) target bundleno = 6 (0x6), region = 105 }
 0x3dc   :  { %875 = vsyncpa [#allocation3], 1 }
 0x3dd   :  { %877 = vsyncpa [#allocation3 + $0x1], 1 }

</bundles_post_ra>
